<compile_context>
chip_gen: v7x
topology: tpu7x:2x2x1
jax: 0.10.0
libtpu: 0.0.40
codegen_flags: <defaults>
</compile_context>

<pallas_src>
import jax
import jax.numpy as jnp
from jax import lax
from jax.experimental import pallas as pl
from jax.experimental.pallas import tpu as pltpu

# Fixed Sobel taps (same 3x3 filter applied to each of the 3 input channels).
_SOBEL_X_2D = ((-1.0, -2.0, -1.0), (0.0, 0.0, 0.0), (1.0, 2.0, 1.0))
_SOBEL_Y_2D = ((-1.0, 0.0, 1.0), (-2.0, 0.0, 2.0), (-1.0, 0.0, 1.0))


# ----------------------------------------------------------------------------- helpers
def _csum_f32(x):
    """Channel-sum in f32 (cast per channel right after load; taps are channel-identical)."""
    return (x[:, 0].astype(jnp.float32)
            + x[:, 1].astype(jnp.float32)
            + x[:, 2].astype(jnp.float32))


def _zero_border(sc_ref, bn, H, W):
    """Zero only the 1-pixel border of the padded scratch (interior is overwritten).

    Runs every grid step: under "parallel" dimension_semantics a core's first step is
    not guaranteed to be program_id 0, and scratch starts uninitialized.
    """
    zrow = jnp.zeros((bn, 1, W + 2), jnp.float32)
    zcol = jnp.zeros((bn, H + 2, 1), jnp.float32)
    sc_ref[:, 0:1, :] = zrow
    sc_ref[:, H + 1:H + 2, :] = zrow
    sc_ref[:, :, 0:1] = zcol
    sc_ref[:, :, W + 1:W + 2] = zcol


def _stencil(s, sc_ref, H, W):
    """Apply both 3x3 Sobel filters to an f32 single-channel plane via a padded scratch."""
    sc_ref[:, 1:H + 1, 1:W + 1] = s

    def tap(dy, dx):                                      # shifted neighbor view
        return sc_ref[:, dy:dy + H, dx:dx + W]

    # 8 shared taps (center tap unused by either filter).
    a, b, c = tap(0, 0), tap(0, 1), tap(0, 2)
    d, f = tap(1, 0), tap(1, 2)
    g, h, i = tap(2, 0), tap(2, 1), tap(2, 2)

    hb = h - b
    fd = f - d
    # sobel_x = col [-1,0,1] (x) row [1,2,1];  sobel_y = col [1,2,1] (x) row [-1,0,1]
    gx = (g - a) + (hb + hb) + (i - c)
    gy = (c - a) + (fd + fd) + (i - g)
    return gx, gy


# ----------------------------------------------------------------------------- kernels
def sobel_maps_kernel(img_ref, tgt_ref, ix_ref, iy_ref, tx_ref, ty_ref,
                      sx_ref, sy_ref, sc_ref):
    bn, _, H, W = img_ref.shape
    _zero_border(sc_ref, bn, H, W)

    # Image gradients: store immediately (drops 2*bn*H*W f32 of live temporaries
    # across the second stencil pass).  Maps are written in the output (=input) dtype.
    gx, gy = _stencil(_csum_f32(img_ref[...]), sc_ref, H, W)
    ix_ref[...] = gx[:, None].astype(ix_ref.dtype)
    iy_ref[...] = gy[:, None].astype(iy_ref.dtype)

    # Target gradients (scratch reused; border still zero).
    tx, ty = _stencil(_csum_f32(tgt_ref[...]), sc_ref, H, W)
    tx4 = tx[:, None]
    ty4 = ty[:, None]
    tx_ref[...] = tx4.astype(tx_ref.dtype)
    ty_ref[...] = ty4.astype(ty_ref.dtype)

    # Per-step partial L1 sums (VMEM readback of ix/iy; final mean/add done in JAX).
    sx_ref[...] = jnp.sum(jnp.abs(ix_ref[...].astype(jnp.float32) - tx4)).reshape(1, 1, 1)
    sy_ref[...] = jnp.sum(jnp.abs(iy_ref[...].astype(jnp.float32) - ty4)).reshape(1, 1, 1)


def sobel_loss_only_kernel(img_ref, tgt_ref, sx_ref, sy_ref, sc_ref):
    # Sobel is linear, so conv(img) - conv(target) == conv(img - target): one stencil
    # pass on the channel-sum difference, no HBM map traffic at all.
    bn, _, H, W = img_ref.shape
    _zero_border(sc_ref, bn, H, W)
    d = _csum_f32(img_ref[...]) - _csum_f32(tgt_ref[...])
    gx, gy = _stencil(d, sc_ref, H, W)
    sx_ref[...] = jnp.sum(jnp.abs(gx)).reshape(1, 1, 1)
    sy_ref[...] = jnp.sum(jnp.abs(gy)).reshape(1, 1, 1)


# ----------------------------------------------------------------------------- wrapper
def _vmem_capacity_bytes():
    try:
        info = pltpu.get_tpu_info()
        return int(getattr(info, "vmem_capacity_bytes", 64 * 1024 * 1024))
    except Exception:
        return 64 * 1024 * 1024  # conservative fallback (v7x per-TC VMEM)


def _pick_batch_block(n, c, h, w, itemsize, return_maps, budget_bytes, min_steps=4):
    """Largest batch divisor that fits the VMEM budget, keeping >= min_steps grid steps
    (when the batch allows) so the "parallel" axis can shard across TensorCores and
    still double-buffer."""
    words = itemsize / 4.0
    in_words = 2 * 2 * c * words                      # 2 inputs, double-buffered
    out_words = (4 * 2 * words) if return_maps else 0.0  # 4 maps, double-buffered
    scratch_words = (h + 2) * (w + 2) / float(h * w)  # padded f32 scratch
    temp_words = 8.0 if return_maps else 6.0          # live f32 temporaries (with margin)
    per_image = 4.0 * h * w * (in_words + out_words + scratch_words + temp_words)

    cap = max(1, n // min_steps) if n >= min_steps else n
    best = 1
    for bn in range(1, n + 1):
        if n % bn == 0 and bn <= cap and bn * per_image <= budget_bytes:
            best = bn
    return best


def sobel_loss(img, target, batch_block=None, return_maps=True):
    N, C, H, W = img.shape
    assert C == 3, "SobelLoss expects 3-channel NCHW input"
    assert target.shape == img.shape
    if target.dtype != img.dtype:
        target = target.astype(img.dtype)
    dtype = img.dtype
    itemsize = jnp.dtype(dtype).itemsize

    vmem_cap = _vmem_capacity_bytes()
    budget = int(0.35 * vmem_cap)                        # batch-block sizing budget
    vmem_limit = int(min(vmem_cap, max(2 * budget, 32 * 1024 * 1024)))

    bn = (batch_block if batch_block is not None
          else _pick_batch_block(N, C, H, W, itemsize, return_maps, budget))
    assert N % bn == 0, "batch_block must divide the batch size"
    G = N // bn

    in_spec = pl.BlockSpec((bn, C, H, W), lambda g: (g, 0, 0, 0))
    sum_spec = pl.BlockSpec((1, 1, 1), lambda g: (g, 0, 0))
    sum_shape = jax.ShapeDtypeStruct((G, 1, 1), jnp.float32)
    scratch = [pltpu.VMEM((bn, H + 2, W + 2), jnp.float32)]
    cparams = pltpu.CompilerParams(
        dimension_semantics=("parallel",),
        vmem_limit_bytes=vmem_limit,
    )

    if return_maps:
        map_spec = pl.BlockSpec((bn, 1, H, W), lambda g: (g, 0, 0, 0))
        map_shape = jax.ShapeDtypeStruct((N, 1, H, W), dtype)
        ix, iy, tx, ty, sx, sy = pl.pallas_call(
            sobel_maps_kernel,
            out_shape=(map_shape, map_shape, map_shape, map_shape, sum_shape, sum_shape),
            grid_spec=pltpu.PrefetchScalarGridSpec(
                num_scalar_prefetch=0,
                grid=(G,),
                in_specs=[in_spec, in_spec],
                out_specs=[map_spec, map_spec, map_spec, map_spec, sum_spec, sum_spec],
                scratch_shapes=scratch),
            compiler_params=cparams,
        )(img, target)
    else:
        sx, sy = pl.pallas_call(
            sobel_loss_only_kernel,
            out_shape=(sum_shape, sum_shape),
            grid_spec=pltpu.PrefetchScalarGridSpec(
                num_scalar_prefetch=0,
                grid=(G,),
                in_specs=[in_spec, in_spec],
                out_specs=[sum_spec, sum_spec],
                scratch_shapes=scratch),
            compiler_params=cparams,
        )(img, target)

    denom = jnp.float32(N * 1 * H * W)  # F.l1_loss default reduction='mean'
    loss = jnp.sum(sx) / denom + jnp.sum(sy) / denom
    if return_maps:
        return ix, iy, tx, ty, loss
    return loss


# ----------------------------------------------------------------------------- reference
def _reference(img, target):
    wx = jnp.broadcast_to(jnp.array(_SOBEL_X_2D, jnp.float32), (1, 3, 3, 3))
    wy = jnp.broadcast_to(jnp.array(_SOBEL_Y_2D, jnp.float32), (1, 3, 3, 3))
    conv = lambda x, w: lax.conv_general_dilated(
        x, w, window_strides=(1, 1), padding=[(1, 1), (1, 1)],
        dimension_numbers=("NCHW", "OIHW", "NCHW"))
    ix, iy = conv(img, wx), conv(img, wy)
    tx, ty = conv(target, wx), conv(target, wy)
    loss = jnp.mean(jnp.abs(ix - tx)) + jnp.mean(jnp.abs(iy - ty))
    return ix, iy, tx, ty, loss


if __name__ == "__main__":
    key = jax.random.PRNGKey(0)
    k1, k2 = jax.random.split(key)
    N, C, H, W = 4, 3, 16, 16
    img = jax.random.normal(k1, (N, C, H, W), jnp.float32)
    target = jax.random.normal(k2, (N, C, H, W), jnp.float32)

    refs = _reference(img, target)

    # (1) Full forward (maps + loss), f32, multi-step "parallel" grid (batch_block=2).
    outs = jax.block_until_ready(sobel_loss(img, target, batch_block=2, return_maps=True))
    for got, want in zip(outs, refs):
        assert jnp.allclose(jnp.asarray(got, jnp.float32), want, atol=1e-4, rtol=1e-4), \
            "maps-mode mismatch vs reference"

    # (2) Loss-only fast path (no map HBM traffic).
    loss_only = jax.block_until_ready(sobel_loss(img, target, batch_block=2, return_maps=False))
    assert jnp.allclose(loss_only, refs[-1], atol=1e-4, rtol=1e-4), \
        "loss-only mismatch vs reference"

    # (3) Native bf16 inputs: maps emitted in bf16, stencil math in f32.
    img_bf = img.astype(jnp.bfloat16)
    tgt_bf = target.astype(jnp.bfloat16)
    refs_bf = _reference(img_bf.astype(jnp.float32), tgt_bf.astype(jnp.float32))
    outs_bf = jax.block_until_ready(sobel_loss(img_bf, tgt_bf, batch_block=2, return_maps=True))
    assert outs_bf[0].dtype == jnp.bfloat16
    for got, want in zip(outs_bf[:4], refs_bf[:4]):
        assert jnp.allclose(got.astype(jnp.float32), want, atol=0.25, rtol=0.02), \
            "bf16 maps mismatch vs reference"
    assert jnp.allclose(outs_bf[4], refs_bf[4], atol=0.05, rtol=0.02), \
        "bf16 loss mismatch vs reference"
    loss_bf = jax.block_until_ready(sobel_loss(img_bf, tgt_bf, batch_block=2, return_maps=False))
    assert jnp.allclose(loss_bf, refs_bf[4], atol=1e-3, rtol=1e-3), \
        "bf16 loss-only mismatch vs reference"

    print("KERNEL_OK")
</pallas_src>

<mosaic_0001>
module attributes {stable_mosaic.version = 11 : i64} {
  func.func @sobel_maps_kernel(%arg0: i32, %arg1: memref<2x3x16x16xf32, #tpu.memory_space<vmem>>, %arg2: memref<2x3x16x16xf32, #tpu.memory_space<vmem>>, %arg3: memref<2x1x16x16xf32, #tpu.memory_space<vmem>>, %arg4: memref<2x1x16x16xf32, #tpu.memory_space<vmem>>, %arg5: memref<2x1x16x16xf32, #tpu.memory_space<vmem>>, %arg6: memref<2x1x16x16xf32, #tpu.memory_space<vmem>>, %arg7: memref<1x1x1xf32, #tpu.memory_space<vmem>>, %arg8: memref<1x1x1xf32, #tpu.memory_space<vmem>>, %arg9: memref<2x18x18xf32, #tpu.memory_space<vmem>>) attributes {dimension_semantics = [#tpu.dimension_semantics<parallel>], iteration_bounds = array<i64: 2>, scalar_prefetch = 0 : i64, scratch_operands = 1 : i64, tpu.core_type = #tpu.core_type<tc>, window_params = [{transform_indices = @transform_0, window_bounds = array<i64: 2, 3, 16, 16>}, {transform_indices = @transform_1, window_bounds = array<i64: 2, 3, 16, 16>}, {transform_indices = @transform_2, window_bounds = array<i64: 2, 1, 16, 16>}, {transform_indices = @transform_3, window_bounds = array<i64: 2, 1, 16, 16>}, {transform_indices = @transform_4, window_bounds = array<i64: 2, 1, 16, 16>}, {transform_indices = @transform_5, window_bounds = array<i64: 2, 1, 16, 16>}, {transform_indices = @transform_6, window_bounds = array<i64: 1, 1, 1>}, {transform_indices = @transform_7, window_bounds = array<i64: 1, 1, 1>}]} {
    %cst = arith.constant 0.000000e+00 : f32
    %0 = vector.broadcast %cst : f32 to vector<2x1x18xf32>
    %cst_0 = arith.constant 0.000000e+00 : f32
    %1 = vector.broadcast %cst_0 : f32 to vector<2x18x1xf32>
    %c0 = arith.constant 0 : index
    %c0_1 = arith.constant 0 : index
    %c0_2 = arith.constant 0 : index
    %2 = vector.load %arg9[%c0, %c0_1, %c0_2] : memref<2x18x18xf32, #tpu.memory_space<vmem>>, vector<2x1x18xf32>
    tpu.vector_store %arg9[%c0, %c0_1, %c0_2], %0 {strides = array<i32>} : memref<2x18x18xf32, #tpu.memory_space<vmem>>, vector<2x1x18xf32>,
    %c0_3 = arith.constant 0 : index
    %c17 = arith.constant 17 : index
    %c0_4 = arith.constant 0 : index
    %3 = vector.load %arg9[%c0_3, %c17, %c0_4] : memref<2x18x18xf32, #tpu.memory_space<vmem>>, vector<2x1x18xf32>
    tpu.vector_store %arg9[%c0_3, %c17, %c0_4], %0 {strides = array<i32>} : memref<2x18x18xf32, #tpu.memory_space<vmem>>, vector<2x1x18xf32>,
    %c0_5 = arith.constant 0 : index
    %c0_6 = arith.constant 0 : index
    %c0_7 = arith.constant 0 : index
    %4 = vector.load %arg9[%c0_5, %c0_6, %c0_7] : memref<2x18x18xf32, #tpu.memory_space<vmem>>, vector<2x18x1xf32>
    tpu.vector_store %arg9[%c0_5, %c0_6, %c0_7], %1 {strides = array<i32>} : memref<2x18x18xf32, #tpu.memory_space<vmem>>, vector<2x18x1xf32>,
    %c0_8 = arith.constant 0 : index
    %c0_9 = arith.constant 0 : index
    %c17_10 = arith.constant 17 : index
    %5 = vector.load %arg9[%c0_8, %c0_9, %c17_10] : memref<2x18x18xf32, #tpu.memory_space<vmem>>, vector<2x18x1xf32>
    tpu.vector_store %arg9[%c0_8, %c0_9, %c17_10], %1 {strides = array<i32>} : memref<2x18x18xf32, #tpu.memory_space<vmem>>, vector<2x18x1xf32>,
    %c0_11 = arith.constant 0 : index
    %c0_12 = arith.constant 0 : index
    %c0_13 = arith.constant 0 : index
    %c0_14 = arith.constant 0 : index
    %6 = vector.load %arg1[%c0_11, %c0_12, %c0_13, %c0_14] : memref<2x3x16x16xf32, #tpu.memory_space<vmem>>, vector<2x3x16x16xf32>
    %7 = vector.extract_strided_slice %6 {offsets = [0, 0, 0, 0], sizes = [2, 1, 16, 16], strides = [1, 1, 1, 1]} : vector<2x3x16x16xf32> to vector<2x1x16x16xf32>
    %8 = vector.shape_cast %7 : vector<2x1x16x16xf32> to vector<2x16x16xf32>
    %9 = vector.extract_strided_slice %6 {offsets = [0, 1, 0, 0], sizes = [2, 1, 16, 16], strides = [1, 1, 1, 1]} : vector<2x3x16x16xf32> to vector<2x1x16x16xf32>
    %10 = vector.shape_cast %9 : vector<2x1x16x16xf32> to vector<2x16x16xf32>
    %11 = arith.addf %8, %10 : vector<2x16x16xf32>
    %12 = vector.extract_strided_slice %6 {offsets = [0, 2, 0, 0], sizes = [2, 1, 16, 16], strides = [1, 1, 1, 1]} : vector<2x3x16x16xf32> to vector<2x1x16x16xf32>
    %13 = vector.shape_cast %12 : vector<2x1x16x16xf32> to vector<2x16x16xf32>
    %14 = arith.addf %11, %13 : vector<2x16x16xf32>
    %c0_15 = arith.constant 0 : index
    %c1 = arith.constant 1 : index
    %c1_16 = arith.constant 1 : index
    %15 = vector.load %arg9[%c0_15, %c1, %c1_16] : memref<2x18x18xf32, #tpu.memory_space<vmem>>, vector<2x16x16xf32>
    tpu.vector_store %arg9[%c0_15, %c1, %c1_16], %14 {strides = array<i32>} : memref<2x18x18xf32, #tpu.memory_space<vmem>>, vector<2x16x16xf32>,
    %c0_17 = arith.constant 0 : index
    %c0_18 = arith.constant 0 : index
    %c0_19 = arith.constant 0 : index
    %16 = vector.load %arg9[%c0_17, %c0_18, %c0_19] : memref<2x18x18xf32, #tpu.memory_space<vmem>>, vector<2x16x16xf32>
    %c0_20 = arith.constant 0 : index
    %c0_21 = arith.constant 0 : index
    %c1_22 = arith.constant 1 : index
    %17 = vector.load %arg9[%c0_20, %c0_21, %c1_22] : memref<2x18x18xf32, #tpu.memory_space<vmem>>, vector<2x16x16xf32>
    %c0_23 = arith.constant 0 : index
    %c0_24 = arith.constant 0 : index
    %c2 = arith.constant 2 : index
    %18 = vector.load %arg9[%c0_23, %c0_24, %c2] : memref<2x18x18xf32, #tpu.memory_space<vmem>>, vector<2x16x16xf32>
    %c0_25 = arith.constant 0 : index
    %c1_26 = arith.constant 1 : index
    %c0_27 = arith.constant 0 : index
    %19 = vector.load %arg9[%c0_25, %c1_26, %c0_27] : memref<2x18x18xf32, #tpu.memory_space<vmem>>, vector<2x16x16xf32>
    %c0_28 = arith.constant 0 : index
    %c1_29 = arith.constant 1 : index
    %c2_30 = arith.constant 2 : index
    %20 = vector.load %arg9[%c0_28, %c1_29, %c2_30] : memref<2x18x18xf32, #tpu.memory_space<vmem>>, vector<2x16x16xf32>
    %c0_31 = arith.constant 0 : index
    %c2_32 = arith.constant 2 : index
    %c0_33 = arith.constant 0 : index
    %21 = vector.load %arg9[%c0_31, %c2_32, %c0_33] : memref<2x18x18xf32, #tpu.memory_space<vmem>>, vector<2x16x16xf32>
    %c0_34 = arith.constant 0 : index
    %c2_35 = arith.constant 2 : index
    %c1_36 = arith.constant 1 : index
    %22 = vector.load %arg9[%c0_34, %c2_35, %c1_36] : memref<2x18x18xf32, #tpu.memory_space<vmem>>, vector<2x16x16xf32>
    %c0_37 = arith.constant 0 : index
    %c2_38 = arith.constant 2 : index
    %c2_39 = arith.constant 2 : index
    %23 = vector.load %arg9[%c0_37, %c2_38, %c2_39] : memref<2x18x18xf32, #tpu.memory_space<vmem>>, vector<2x16x16xf32>
    %24 = arith.subf %22, %17 : vector<2x16x16xf32>
    %25 = arith.subf %20, %19 : vector<2x16x16xf32>
    %26 = arith.subf %21, %16 : vector<2x16x16xf32>
    %27 = arith.addf %24, %24 : vector<2x16x16xf32>
    %28 = arith.addf %26, %27 : vector<2x16x16xf32>
    %29 = arith.subf %23, %18 : vector<2x16x16xf32>
    %30 = arith.addf %28, %29 : vector<2x16x16xf32>
    %31 = arith.subf %18, %16 : vector<2x16x16xf32>
    %32 = arith.addf %25, %25 : vector<2x16x16xf32>
    %33 = arith.addf %31, %32 : vector<2x16x16xf32>
    %34 = arith.subf %23, %21 : vector<2x16x16xf32>
    %35 = arith.addf %33, %34 : vector<2x16x16xf32>
    %36 = vector.shape_cast %30 : vector<2x16x16xf32> to vector<2x1x16x16xf32>
    %c0_40 = arith.constant 0 : index
    %c0_41 = arith.constant 0 : index
    %c0_42 = arith.constant 0 : index
    %c0_43 = arith.constant 0 : index
    %37 = vector.load %arg3[%c0_40, %c0_41, %c0_42, %c0_43] : memref<2x1x16x16xf32, #tpu.memory_space<vmem>>, vector<2x1x16x16xf32>
    tpu.vector_store %arg3[%c0_40, %c0_41, %c0_42, %c0_43], %36 {strides = array<i32>} : memref<2x1x16x16xf32, #tpu.memory_space<vmem>>, vector<2x1x16x16xf32>,
    %38 = vector.shape_cast %35 : vector<2x16x16xf32> to vector<2x1x16x16xf32>
    %c0_44 = arith.constant 0 : index
    %c0_45 = arith.constant 0 : index
    %c0_46 = arith.constant 0 : index
    %c0_47 = arith.constant 0 : index
    %39 = vector.load %arg4[%c0_44, %c0_45, %c0_46, %c0_47] : memref<2x1x16x16xf32, #tpu.memory_space<vmem>>, vector<2x1x16x16xf32>
    tpu.vector_store %arg4[%c0_44, %c0_45, %c0_46, %c0_47], %38 {strides = array<i32>} : memref<2x1x16x16xf32, #tpu.memory_space<vmem>>, vector<2x1x16x16xf32>,
    %c0_48 = arith.constant 0 : index
    %c0_49 = arith.constant 0 : index
    %c0_50 = arith.constant 0 : index
    %c0_51 = arith.constant 0 : index
    %40 = vector.load %arg2[%c0_48, %c0_49, %c0_50, %c0_51] : memref<2x3x16x16xf32, #tpu.memory_space<vmem>>, vector<2x3x16x16xf32>
    %41 = vector.extract_strided_slice %40 {offsets = [0, 0, 0, 0], sizes = [2, 1, 16, 16], strides = [1, 1, 1, 1]} : vector<2x3x16x16xf32> to vector<2x1x16x16xf32>
    %42 = vector.shape_cast %41 : vector<2x1x16x16xf32> to vector<2x16x16xf32>
    %43 = vector.extract_strided_slice %40 {offsets = [0, 1, 0, 0], sizes = [2, 1, 16, 16], strides = [1, 1, 1, 1]} : vector<2x3x16x16xf32> to vector<2x1x16x16xf32>
    %44 = vector.shape_cast %43 : vector<2x1x16x16xf32> to vector<2x16x16xf32>
    %45 = arith.addf %42, %44 : vector<2x16x16xf32>
    %46 = vector.extract_strided_slice %40 {offsets = [0, 2, 0, 0], sizes = [2, 1, 16, 16], strides = [1, 1, 1, 1]} : vector<2x3x16x16xf32> to vector<2x1x16x16xf32>
    %47 = vector.shape_cast %46 : vector<2x1x16x16xf32> to vector<2x16x16xf32>
    %48 = arith.addf %45, %47 : vector<2x16x16xf32>
    %c0_52 = arith.constant 0 : index
    %c1_53 = arith.constant 1 : index
    %c1_54 = arith.constant 1 : index
    %49 = vector.load %arg9[%c0_52, %c1_53, %c1_54] : memref<2x18x18xf32, #tpu.memory_space<vmem>>, vector<2x16x16xf32>
    tpu.vector_store %arg9[%c0_52, %c1_53, %c1_54], %48 {strides = array<i32>} : memref<2x18x18xf32, #tpu.memory_space<vmem>>, vector<2x16x16xf32>,
    %c0_55 = arith.constant 0 : index
    %c0_56 = arith.constant 0 : index
    %c0_57 = arith.constant 0 : index
    %50 = vector.load %arg9[%c0_55, %c0_56, %c0_57] : memref<2x18x18xf32, #tpu.memory_space<vmem>>, vector<2x16x16xf32>
    %c0_58 = arith.constant 0 : index
    %c0_59 = arith.constant 0 : index
    %c1_60 = arith.constant 1 : index
    %51 = vector.load %arg9[%c0_58, %c0_59, %c1_60] : memref<2x18x18xf32, #tpu.memory_space<vmem>>, vector<2x16x16xf32>
    %c0_61 = arith.constant 0 : index
    %c0_62 = arith.constant 0 : index
    %c2_63 = arith.constant 2 : index
    %52 = vector.load %arg9[%c0_61, %c0_62, %c2_63] : memref<2x18x18xf32, #tpu.memory_space<vmem>>, vector<2x16x16xf32>
    %c0_64 = arith.constant 0 : index
    %c1_65 = arith.constant 1 : index
    %c0_66 = arith.constant 0 : index
    %53 = vector.load %arg9[%c0_64, %c1_65, %c0_66] : memref<2x18x18xf32, #tpu.memory_space<vmem>>, vector<2x16x16xf32>
    %c0_67 = arith.constant 0 : index
    %c1_68 = arith.constant 1 : index
    %c2_69 = arith.constant 2 : index
    %54 = vector.load %arg9[%c0_67, %c1_68, %c2_69] : memref<2x18x18xf32, #tpu.memory_space<vmem>>, vector<2x16x16xf32>
    %c0_70 = arith.constant 0 : index
    %c2_71 = arith.constant 2 : index
    %c0_72 = arith.constant 0 : index
    %55 = vector.load %arg9[%c0_70, %c2_71, %c0_72] : memref<2x18x18xf32, #tpu.memory_space<vmem>>, vector<2x16x16xf32>
    %c0_73 = arith.constant 0 : index
    %c2_74 = arith.constant 2 : index
    %c1_75 = arith.constant 1 : index
    %56 = vector.load %arg9[%c0_73, %c2_74, %c1_75] : memref<2x18x18xf32, #tpu.memory_space<vmem>>, vector<2x16x16xf32>
    %c0_76 = arith.constant 0 : index
    %c2_77 = arith.constant 2 : index
    %c2_78 = arith.constant 2 : index
    %57 = vector.load %arg9[%c0_76, %c2_77, %c2_78] : memref<2x18x18xf32, #tpu.memory_space<vmem>>, vector<2x16x16xf32>
    %58 = arith.subf %56, %51 : vector<2x16x16xf32>
    %59 = arith.subf %54, %53 : vector<2x16x16xf32>
    %60 = arith.subf %55, %50 : vector<2x16x16xf32>
    %61 = arith.addf %58, %58 : vector<2x16x16xf32>
    %62 = arith.addf %60, %61 : vector<2x16x16xf32>
    %63 = arith.subf %57, %52 : vector<2x16x16xf32>
    %64 = arith.addf %62, %63 : vector<2x16x16xf32>
    %65 = arith.subf %52, %50 : vector<2x16x16xf32>
    %66 = arith.addf %59, %59 : vector<2x16x16xf32>
    %67 = arith.addf %65, %66 : vector<2x16x16xf32>
    %68 = arith.subf %57, %55 : vector<2x16x16xf32>
    %69 = arith.addf %67, %68 : vector<2x16x16xf32>
    %70 = vector.shape_cast %64 : vector<2x16x16xf32> to vector<2x1x16x16xf32>
    %71 = vector.shape_cast %69 : vector<2x16x16xf32> to vector<2x1x16x16xf32>
    %c0_79 = arith.constant 0 : index
    %c0_80 = arith.constant 0 : index
    %c0_81 = arith.constant 0 : index
    %c0_82 = arith.constant 0 : index
    %72 = vector.load %arg5[%c0_79, %c0_80, %c0_81, %c0_82] : memref<2x1x16x16xf32, #tpu.memory_space<vmem>>, vector<2x1x16x16xf32>
    tpu.vector_store %arg5[%c0_79, %c0_80, %c0_81, %c0_82], %70 {strides = array<i32>} : memref<2x1x16x16xf32, #tpu.memory_space<vmem>>, vector<2x1x16x16xf32>,
    %c0_83 = arith.constant 0 : index
    %c0_84 = arith.constant 0 : index
    %c0_85 = arith.constant 0 : index
    %c0_86 = arith.constant 0 : index
    %73 = vector.load %arg6[%c0_83, %c0_84, %c0_85, %c0_86] : memref<2x1x16x16xf32, #tpu.memory_space<vmem>>, vector<2x1x16x16xf32>
    tpu.vector_store %arg6[%c0_83, %c0_84, %c0_85, %c0_86], %71 {strides = array<i32>} : memref<2x1x16x16xf32, #tpu.memory_space<vmem>>, vector<2x1x16x16xf32>,
    %c0_87 = arith.constant 0 : index
    %c0_88 = arith.constant 0 : index
    %c0_89 = arith.constant 0 : index
    %c0_90 = arith.constant 0 : index
    %74 = vector.load %arg3[%c0_87, %c0_88, %c0_89, %c0_90] : memref<2x1x16x16xf32, #tpu.memory_space<vmem>>, vector<2x1x16x16xf32>
    %75 = arith.subf %74, %70 : vector<2x1x16x16xf32>
    %76 = math.absf %75 : vector<2x1x16x16xf32>
    %77 = vector.shape_cast %76 : vector<2x1x16x16xf32> to vector<1x2x1x16x16xf32>
    %cst_91 = arith.constant dense<0.000000e+00> : vector<1xf32>
    %78 = vector.multi_reduction <add>, %77, %cst_91 [1, 2, 3, 4] : vector<1x2x1x16x16xf32> to vector<1xf32>
    %79 = vector.shape_cast %78 : vector<1xf32> to vector<1x1x1x1x1xf32>
    %80 = vector.extract %79[0, 0, 0, 0, 0] : f32 from vector<1x1x1x1x1xf32>
    %81 = vector.broadcast %80 : f32 to vector<1x1x1xf32>
    %c0_92 = arith.constant 0 : index
    %c0_93 = arith.constant 0 : index
    %c0_94 = arith.constant 0 : index
    %82 = vector.load %arg7[%c0_92, %c0_93, %c0_94] : memref<1x1x1xf32, #tpu.memory_space<vmem>>, vector<1x1x1xf32>
    tpu.vector_store %arg7[%c0_92, %c0_93, %c0_94], %81 {strides = array<i32>} : memref<1x1x1xf32, #tpu.memory_space<vmem>>, vector<1x1x1xf32>,
    %c0_95 = arith.constant 0 : index
    %c0_96 = arith.constant 0 : index
    %c0_97 = arith.constant 0 : index
    %c0_98 = arith.constant 0 : index
    %83 = vector.load %arg4[%c0_95, %c0_96, %c0_97, %c0_98] : memref<2x1x16x16xf32, #tpu.memory_space<vmem>>, vector<2x1x16x16xf32>
    %84 = arith.subf %83, %71 : vector<2x1x16x16xf32>
    %85 = math.absf %84 : vector<2x1x16x16xf32>
    %86 = vector.shape_cast %85 : vector<2x1x16x16xf32> to vector<1x2x1x16x16xf32>
    %cst_99 = arith.constant dense<0.000000e+00> : vector<1xf32>
    %87 = vector.multi_reduction <add>, %86, %cst_99 [1, 2, 3, 4] : vector<1x2x1x16x16xf32> to vector<1xf32>
    %88 = vector.shape_cast %87 : vector<1xf32> to vector<1x1x1x1x1xf32>
    %89 = vector.extract %88[0, 0, 0, 0, 0] : f32 from vector<1x1x1x1x1xf32>
    %90 = vector.broadcast %89 : f32 to vector<1x1x1xf32>
    %c0_100 = arith.constant 0 : index
    %c0_101 = arith.constant 0 : index
    %c0_102 = arith.constant 0 : index
    %91 = vector.load %arg8[%c0_100, %c0_101, %c0_102] : memref<1x1x1xf32, #tpu.memory_space<vmem>>, vector<1x1x1xf32>
    tpu.vector_store %arg8[%c0_100, %c0_101, %c0_102], %90 {strides = array<i32>} : memref<1x1x1xf32, #tpu.memory_space<vmem>>, vector<1x1x1xf32>,
    return
  }
  func.func @transform_0(%arg0: i32) -> (i32, i32, i32, i32) {
    %c0_i32 = arith.constant 0 : i32
    %c0_i32_0 = arith.constant 0 : i32
    %c0_i32_1 = arith.constant 0 : i32
    %c0_i32_2 = arith.constant 0 : i32
    return %arg0, %c0_i32, %c0_i32_0, %c0_i32_1 : i32, i32, i32, i32
  }
  func.func @transform_1(%arg0: i32) -> (i32, i32, i32, i32) {
    %c0_i32 = arith.constant 0 : i32
    %c0_i32_0 = arith.constant 0 : i32
    %c0_i32_1 = arith.constant 0 : i32
    %c0_i32_2 = arith.constant 0 : i32
    return %arg0, %c0_i32, %c0_i32_0, %c0_i32_1 : i32, i32, i32, i32
  }
  func.func @transform_2(%arg0: i32) -> (i32, i32, i32, i32) {
    %c0_i32 = arith.constant 0 : i32
    %c0_i32_0 = arith.constant 0 : i32
    %c0_i32_1 = arith.constant 0 : i32
    %c0_i32_2 = arith.constant 0 : i32
    return %arg0, %c0_i32, %c0_i32_0, %c0_i32_1 : i32, i32, i32, i32
  }
  func.func @transform_3(%arg0: i32) -> (i32, i32, i32, i32) {
    %c0_i32 = arith.constant 0 : i32
    %c0_i32_0 = arith.constant 0 : i32
    %c0_i32_1 = arith.constant 0 : i32
    %c0_i32_2 = arith.constant 0 : i32
    return %arg0, %c0_i32, %c0_i32_0, %c0_i32_1 : i32, i32, i32, i32
  }
  func.func @transform_4(%arg0: i32) -> (i32, i32, i32, i32) {
    %c0_i32 = arith.constant 0 : i32
    %c0_i32_0 = arith.constant 0 : i32
    %c0_i32_1 = arith.constant 0 : i32
    %c0_i32_2 = arith.constant 0 : i32
    return %arg0, %c0_i32, %c0_i32_0, %c0_i32_1 : i32, i32, i32, i32
  }
  func.func @transform_5(%arg0: i32) -> (i32, i32, i32, i32) {
    %c0_i32 = arith.constant 0 : i32
    %c0_i32_0 = arith.constant 0 : i32
    %c0_i32_1 = arith.constant 0 : i32
    %c0_i32_2 = arith.constant 0 : i32
    return %arg0, %c0_i32, %c0_i32_0, %c0_i32_1 : i32, i32, i32, i32
  }
  func.func @transform_6(%arg0: i32) -> (i32, i32, i32) {
    %c0_i32 = arith.constant 0 : i32
    %c0_i32_0 = arith.constant 0 : i32
    %c0_i32_1 = arith.constant 0 : i32
    return %arg0, %c0_i32, %c0_i32_0 : i32, i32, i32
  }
  func.func @transform_7(%arg0: i32) -> (i32, i32, i32) {
    %c0_i32 = arith.constant 0 : i32
    %c0_i32_0 = arith.constant 0 : i32
    %c0_i32_1 = arith.constant 0 : i32
    return %arg0, %c0_i32, %c0_i32_0 : i32, i32, i32
  }
}

</mosaic_0001>

<bundles_post_ra>
// kernel: tpu_custom_call.1
= control target key start
LH: loop header
LB: loop body
LE: loop exit
PB: predicated region body
PF: predicated region fallthrough
CT: control target
= control target key end

     0   :  { %s2234_s0 = inlined_call_operand.hbm [shape: f32[4,3,16,16], index: 0, kind: input, shape index: {}]   ;;  %s2235_s1 = inlined_call_operand.hbm [shape: f32[4,3,16,16], index: 1, kind: input, shape index: {}]   ;;  %s2236_s2 = inlined_call_operand.hbm [shape: f32[4,1,16,16], index: 2, kind: output, shape index: {0}]   ;;  %s2237_s3 = inlined_call_operand.hbm [shape: f32[4,1,16,16], index: 3, kind: output, shape index: {1}]   ;;  %s2238_s4 = inlined_call_operand.hbm [shape: f32[4,1,16,16], index: 4, kind: output, shape index: {2}]   ;;  %s2239_s5 = inlined_call_operand.hbm [shape: f32[4,1,16,16], index: 5, kind: output, shape index: {3}]   ;;  %s2240_s6 = inlined_call_operand.vmem [shape: f32[2,1,1], index: 6, kind: output, shape index: {4}]   ;;  %s2241_s7 = inlined_call_operand.vmem [shape: f32[2,1,1], index: 7, kind: output, shape index: {5}]  }
   0x1   :  { %2248 = sst [smem:[#allocation21_spill]] %s2234_s0 }
   0x2   :  { %2249 = sst [smem:[#allocation22_spill]] %s2235_s1 }
   0x3   :  { %2250 = sst [smem:[#allocation23_spill]] %s2237_s3 }
   0x4   :  { %13 = vsyncpa [#allocation4], 0 }
   0x5   :  { %15 = vsyncpa [#allocation4 + $0x1], 0 }
   0x6   :  { %16 = vsyncpa [#allocation7], 0 }
   0x7   :  { %18 = vsyncpa [#allocation7 + $0x1], 0 }
   0x8   :  { %19 = vsyncpa [#allocation5], 0 }
   0x9   :  { %21 = vsyncpa [#allocation5 + $0x1], 0 }
   0xa   :  { %22 = vsyncpa [#allocation10], 0 }
   0xb   :  { %24 = vsyncpa [#allocation10 + $0x1], 0 }
   0xc   :  { %25 = vsyncpa [#allocation13], 0 }
   0xd   :  { %27 = vsyncpa [#allocation13 + $0x1], 0  ;;  %s1588_s24 = smov 0   ;;  %s1590_s25 = smov 0  }
   0xe   :  { %s1592_s26 = smov 0   ;;  %s1594_s27 = smov 0  }
   0xf LB: > { %2251 = sst [smem:[#allocation19_spill]] %s1527_s26  ;;  %s1609_s28 = sadd.s32 4294967295, %s1531_s27   ;;  %s1531_s27 = sphi %s1594_s27, %s2272_s27   ;;  %s1527_s26 = sphi %s1592_s26, %s2269_s26   ;;  %s1523_s25 = sphi %s1590_s25, %s2271_s25   ;;  %s1519_s24 = sphi %s1588_s24, %s2270_s24  }
  0x10   : > { %s2242_s29 = sadd.s32 4294967294, %s1531_s27   ;;  %s1613_s30 = sadd.s32 1, %s1531_s27  }
  0x11   : > { %s40_s8 = sadd.s32 1, %s1527_s26  ;;  %s37_s9 = ssub.s32 %s1531_s27, %s1613_s30 }
  0x12   : > { %p47_p0 = scmp.ne.s32.totalorder %s1527_s26, %s1523_s25  ;;  %p38_p1 = scmp.eq.s32.totalorder %s37_s9, 0 }
  0x13   : > { %p48_p2 = scmp.eq.s32.totalorder %s1531_s27, 0  ;;  %p53_p3 = scmp.ne.s32.totalorder %s1523_s25, %s1519_s24 }
  0x14   : > { %p54_p4 = scmp.eq.s32.totalorder %s1609_s28, 0  ;;  %p103_p7 = scmp.eq.s32.totalorder %s1609_s28, 1 }
  0x15   : > { %s1625_s10 = scalar_select %p38_p1, %s1527_s26, %s40_s8  }
  0x16   : > { %p49_p5 = por %p48_p2, %p47_p0  ;;  %p1627_p6 = por %p54_p4, %p53_p3 }
  0x17   : > { %2252 = sst [smem:[#allocation20_spill]] %s1625_s10  ;;  %p109_p8 = scmp.eq.s32.totalorder %s2242_s29, 1 }
  0x18   : > { %s2253_s11 = scalar_select %p1627_p6, 1, 0 }
  0x19   : > { %p1266_p10 = scmp.lt.s32.totalorder %s1531_s27, 2  ;;  %p1636_p11 = por %p103_p7, %p47_p0 }
  0x1a   : > { %p1640_p12 = por %p109_p8, %p53_p3  ;;  %s1645_s14 = sand.u32 1, %s1527_s26  }
  0x1b   : > { %s2254_s12 = scalar_select %p1636_p11, 1, 0 }
  0x1c   : > { %s2255_s13 = scalar_select %p1640_p12, 1, 0 }
  0x1d   : > { %s2243_s15 = smul.u32 1536, %s1531_s27  ;;  %s2256_s0 = sld [smem:[#allocation21_spill]] }
  0x1e   : > { %s1225_s16 = smul.u32 96, %s1645_s14  ;;  %p1656_p13 = pnand %p1266_p10, %p49_p5 }
  0x1f   : > { %s260_s23 = scalar_lea.sflag [#allocation4], %s1645_s14 }
  0x20   : > { %s263_s21 = scalar_lea.vmem [#allocation3], %s1225_s16  ;;  %p1311_p1 = pneg %p1656_p13 }
  0x21   : > { %s271_s22 = sshll.u32 %s263_s21, 4  ;;  %s1662_s22 = int_to_ptr.vmem [resolvable:$true] %s271_s22 }
  0x23   : > { %s1654_s19 = scalar_lea.hbm %s2256_s0, %s2243_s15  ;;  %s1314_s18 = scalar_lea.hbm %s2256_s0, 3072 }
  0x24   : > { %s1309_s8 = scalar_lea.hbm %s1654_s19, 1536  ;;  %p1315_p4 = scmp.lt.u32.totalorder %s1654_s19, %s2256_s0 }
  0x25   : > { %p1310_p0 = scmp.ne.s32.totalorder %s1654_s19, %s1309_s8  ;;  %p1316_p5 = scmp.lt.u32.totalorder %s1314_s18, %s1309_s8 }
  0x26   : > { %p1318_p8 = scmp.lt.u32.totalorder %s1309_s8, %s1654_s19 }
  0x27   : > { %p1312_p2 = pnand %p1311_p1, %p1310_p0  ;;  %p1317_p7 = por %p1316_p5, %p1315_p4 }
  0x29   : > { %p1313_p3 = pneg %p1312_p2  ;;  %p1319_p10 = por %p1318_p8, %p1317_p7 }
  0x2b   : > { %p1320_p9 = pnand %p1319_p10, %p1313_p3 }
  0x2d   : > { %1323 = shalt.err (!%p1320_p9)
}
  0x2e   : > { %s1324_s21 = scalar_lea.vmem %s1662_s22, 1536  ;;  %s1533_s9 = smov [#allocation3]  }
  0x2f   : > { %p1325_p0 = scmp.ne.s32.totalorder %s1662_s22, %s1324_s21  ;;  %s1329_s17 = sshll.u32 %s1533_s9, 4  ;;  %s1330_s17 = int_to_ptr.vmem [resolvable:$false] %s1329_s17 }
  0x30   : > { %s1331_s29 = scalar_lea.vmem %s1330_s17, 3072  ;;  %p1332_p11 = scmp.lt.s32.totalorder %s1662_s22, %s1330_s17 }
  0x31   : > { %p1327_p2 = pnand %p1325_p0, %p1311_p1  ;;  %p1333_p4 = scmp.lt.s32.totalorder %s1331_s29, %s1324_s21 }
  0x33   : > { %p1328_p12 = pneg %p1327_p2  ;;  %p1334_p5 = por %p1333_p4, %p1332_p11 }
  0x35   : > { %p1335_p7 = pnand %p1334_p5, %p1328_p12 }
  0x37   : > { %1338 = shalt.err (!%p1335_p7)
}
  0x38   : > { %s2245_s15 = smov 128   ;;  %s1535_s8 = smov 8  }
  0x39   : > { %1249 = dma.hbm_to_vmem [thread:$0]  (!%p1656_p13), %s1654_s19, 1536, %s1662_s22, %s260_s23, %s2245_s15, %s2245_s15, %s1535_s8  }
  0x3a   : > { %p1194_p9 = scmp.ge.s32.totalorder %s1531_s27, 1  ;;  %p301_p11 = scmp.lt.s32.totalorder %s1531_s27, 3 }
  0x3b   : > { %s2259_s21 = smul.u32 1536, %s1531_s27  ;;  %s2260_s1 = sld [smem:[#allocation22_spill]] }
  0x3c   : > { %p1697_p12 = pnand %p1194_p9, %p301_p11  ;;  %s285_s0 = scalar_lea.vmem [#allocation6], %s1225_s16 }
  0x3d   : > { %s293_s10 = sshll.u32 %s285_s0, 4  ;;  %s282_s19 = scalar_lea.sflag [#allocation7], %s1645_s14  ;;  %s1710_s10 = int_to_ptr.vmem [resolvable:$true] %s293_s10 }
  0x41   : > { %s1706_s29 = scalar_lea.hbm %s2260_s1, %s2259_s21  ;;  %s1344_s21 = scalar_lea.hbm %s2260_s1, 3072 }
  0x42   : > { %s1339_s22 = scalar_lea.hbm %s1706_s29, 1536  ;;  %p1345_p0 = scmp.lt.u32.totalorder %s1706_s29, %s2260_s1 }
  0x43   : > { %p1340_p3 = scmp.ne.s32.totalorder %s1706_s29, %s1339_s22  ;;  %p1346_p2 = scmp.lt.u32.totalorder %s1344_s21, %s1339_s22 }
  0x44   : > { %p1348_p5 = scmp.lt.u32.totalorder %s1339_s22, %s1706_s29 }
  0x45   : > { %p1342_p8 = pnand %p1340_p3, %p1311_p1  ;;  %p1347_p4 = por %p1346_p2, %p1345_p0 }
  0x47   : > { %p1343_p10 = pneg %p1342_p8  ;;  %p1349_p7 = por %p1348_p5, %p1347_p4 }
  0x49   : > { %p1350_p9 = pnand %p1349_p7, %p1343_p10 }
  0x4b   : > { %1353 = shalt.err (!%p1350_p9)
}
  0x4c   : > { %s1354_s0 = scalar_lea.vmem %s1710_s10, 1536  ;;  %s1536_s16 = smov [#allocation6]  }
  0x4d   : > { %p1355_p11 = scmp.ne.s32.totalorder %s1710_s10, %s1354_s0  ;;  %s1359_s23 = sshll.u32 %s1536_s16, 4  ;;  %s1360_s23 = int_to_ptr.vmem [resolvable:$false] %s1359_s23 }
  0x4e   : > { %s1361_s15 = scalar_lea.vmem %s1360_s23, 3072  ;;  %p1362_p6 = scmp.lt.s32.totalorder %s1710_s10, %s1360_s23 }
  0x4f   : > { %p1357_p3 = pnand %p1355_p11, %p1311_p1  ;;  %p1363_p0 = scmp.lt.s32.totalorder %s1361_s15, %s1354_s0 }
  0x51   : > { %p1358_p8 = pneg %p1357_p3  ;;  %p1364_p2 = por %p1363_p0, %p1362_p6 }
  0x53   : > { %p1365_p4 = pnand %p1364_p2, %p1358_p8 }
  0x55   : > { %1368 = shalt.err (!%p1365_p4)
}
  0x56   : > { %s2261_s22 = smov 128   ;;  %305 = sbr.rel (%p1697_p12) target bundleno = 734 (0x2de), region = 28 }
  0x57   : > { %1252 = dma.hbm_to_vmem [thread:$0]  (!%p1656_p13), %s1706_s29, 1536, %s1710_s10, %s282_s19, %s2261_s22, %s2261_s22, %s1535_s8  }
  0x58   : > { %s1744_s9 = sand.u32 (!%p1697_p12), 1, %s1523_s25   ;;  %p2262_p6 = scmp.ne.s32.totalorder (!%p1697_p12), %s2253_s11, 0 }
  0x59   : > { %s1229_s21 = smul.u32 (!%p1697_p12), 96, %s1744_s9  ;;  %s308_s17 = scalar_lea.sflag (!%p1697_p12), [#allocation4], %s1744_s9 }
  0x5b   : > { %s1748_s20 = scalar_lea.vmem (!%p1697_p12), [#allocation3], %s1229_s21 }
  0x5d   : > { %1498 = dma.done.wait (%p2262_p6), %s308_s17, 1536  }
  0x5e   : > { %1500 = vsyncadd (%p2262_p6), %s308_s17, 4294965760  ;;  %s317_s10 = scalar_lea.sflag [#allocation7], %s1744_s9  ;;  %s1755_s14 = scalar_lea.vmem [#allocation6], %s1229_s21 }
  0x5f   : > { %1502 = dma.done.wait (%p2262_p6), %s317_s10, 1536  }
  0x60   : > { %1504 = vsyncadd (%p2262_p6), %s317_s10, 4294965760  ;;  %vm389_vm0 = vcmask 139264   ;;  %vm394_vm1 = vcmask 7168   ;;  %vm402_vm2 = vcmask 146568   ;;  %v1537_v0 = vmov 0.0   ;;  %v410_v1 = vld [vmem:[%s1748_s20] sm:$0xff] }
  0x61   : > { %390 = vst.msk [vmem:[#allocation2] sm:$0x1] %vm389_vm0, %v1537_v0  ;;  %391 = vst.msk [vmem:[#allocation2 + $0x18] sm:$0x1] %vm389_vm0, %v1537_v0  ;;  %vm397_vm3 = vcmask 1024   ;;  %vm405_vm4 = vcmask 140424  }
  0x62   : > { %396 = vst.msk [vmem:[#allocation2 + $0x8] sm:$0xff] %vm394_vm1, %v1537_v0  ;;  %400 = vst.msk [vmem:[#allocation2 + $0x20] sm:$0xff] %vm394_vm1, %v1537_v0  ;;  %v412_v2 = vld [vmem:[%s1748_s20 + $0x10] sm:$0xff]  ;;  %v414_v3 = vld [vmem:[%s1748_s20 + $0x20] sm:$0xff]  ;;  %s1538_s11 = smov 1   ;;  %vm446_vm5 = vcmask 138248  }
  0x63   : > { %392 = vst.msk [vmem:[#allocation2 + $0x11] sm:$0x1] %vm389_vm0, %v1537_v0  ;;  %393 = vst.msk [vmem:[#allocation2 + $0x29] sm:$0x1] %vm389_vm0, %v1537_v0  ;;  %v422_v4 = vadd.f32 %v412_v2, %v410_v1  ;;  %v416_v5 = vld [vmem:[%s1748_s20 + $0x30] sm:$0xff]  ;;  %v418_v6 = vld [vmem:[%s1748_s20 + $0x40] sm:$0xff] }
  0x64   : > { %395 = vst.msk [vmem:[#allocation2] sm:$0xff] %vm394_vm1, %v1537_v0  ;;  %399 = vst.msk [vmem:[#allocation2 + $0x18] sm:$0xff] %vm394_vm1, %v1537_v0  ;;  %v420_v7 = vld [vmem:[%s1748_s20 + $0x50] sm:$0xff]  ;;  %v424_v8 = vadd.f32 %v418_v6, %v416_v5  ;;  %v411_v9 = vld [vmem:[%s1748_s20 + $0x8] sm:$0xff]  ;;  %s1539_s8 = smov 2   ;;  %s1540_s18 = smov 127  }
  0x65   : > { %404 = vst.msk [vmem:[#allocation2 + $0x8] sm:$0xff] %vm402_vm2, %v1537_v0  ;;  %408 = vst.msk [vmem:[#allocation2 + $0x20] sm:$0xff] %vm402_vm2, %v1537_v0  ;;  %v413_v10 = vld [vmem:[%s1748_s20 + $0x18] sm:$0xff]  ;;  %v415_v11 = vld [vmem:[%s1748_s20 + $0x28] sm:$0xff]  ;;  %v426_v12 = vadd.f32 %v422_v4, %v414_v3  ;;  %s1541_s29 = smov 126   ;;  %s1990_s19 = sshll.u32 %s1744_s9, 5 }
  0x66   : > { %398 = vst.msk [vmem:[#allocation2 + $0x10] sm:$0x3] %vm397_vm3, %v1537_v0  ;;  %401 = vst.msk [vmem:[#allocation2 + $0x28] sm:$0x3] %vm397_vm3, %v1537_v0  ;;  %v423_v13 = vadd.f32 %v413_v10, %v411_v9  ;;  %v417_v14 = vld [vmem:[%s1748_s20 + $0x38] sm:$0xff]  ;;  %v419_v15 = vld [vmem:[%s1748_s20 + $0x48] sm:$0xff]  ;;  %v428_v17 = vadd.f32 %v424_v8, %v420_v7 }
  0x67   : > { %403 = vst.msk [vmem:[#allocation2] sm:$0xff] %vm402_vm2, %v1537_v0  ;;  %407 = vst.msk [vmem:[#allocation2 + $0x18] sm:$0xff] %vm402_vm2, %v1537_v0  ;;  %v421_v16 = vld [vmem:[%s1748_s20 + $0x58] sm:$0xff]  ;;  %v425_v18 = vadd.f32 %v419_v15, %v417_v14  ;;  %v608_v19 = vld [vmem:[%s1755_s14] sm:$0xff]  ;;  %434 = vrot.lane.b32.xlu0 %v426_v12, %s1538_s11  ;;  %vm583_vm6 = vcmask 130048   ;;  %s1996_s0 = scalar_lea.vmem [#allocation8], %s1990_s19 }
  0x68   : > { %406 = vst.msk [vmem:[#allocation2 + $0x10] sm:$0x3] %vm405_vm4, %v1537_v0  ;;  %409 = vst.msk [vmem:[#allocation2 + $0x28] sm:$0x3] %vm405_vm4, %v1537_v0  ;;  %v610_v20 = vld [vmem:[%s1755_s14 + $0x10] sm:$0xff]  ;;  %v427_v21 = vadd.f32 %v423_v13, %v415_v11  ;;  %v609_v23 = vld [vmem:[%s1755_s14 + $0x8] sm:$0xff]  ;;  %438 = vrot.lane.b32.xlu1 %v428_v17, %s1538_s11 }
  0x69   : > { %v620_v22 = vadd.f32 %v610_v20, %v608_v19  ;;  %v611_v24 = vld [vmem:[%s1755_s14 + $0x18] sm:$0xff]  ;;  %v429_v25 = vadd.f32 %v425_v18, %v421_v16  ;;  %v612_v26 = vld [vmem:[%s1755_s14 + $0x20] sm:$0xff]  ;;  %v614_v28 = vld [vmem:[%s1755_s14 + $0x30] sm:$0xff]  ;;  %s2010_s16 = scalar_lea.vmem [#allocation11], %s1990_s19  ;;  %s2031_s23 = scalar_lea.vmem [#allocation9], %s1990_s19 }
  0x6a   : > { %v621_v27 = vadd.f32 %v611_v24, %v609_v23  ;;  %v616_v29 = vld [vmem:[%s1755_s14 + $0x40] sm:$0xff]  ;;  %v613_v30 = vld [vmem:[%s1755_s14 + $0x28] sm:$0xff]  ;;  %v615_v31 = vld [vmem:[%s1755_s14 + $0x38] sm:$0xff]  ;;  %s2044_s15 = scalar_lea.vmem [#allocation12], %s1990_s19  ;;  %s935_s22 = sshll.u32 %s2010_s16, 4  ;;  %s2062_s22 = int_to_ptr.vmem [resolvable:$true] %s935_s22 }
  0x6b   : > { %v617_v32 = vld [vmem:[%s1755_s14 + $0x48] sm:$0xff]  ;;  %436 = vrot.lane.b32.xlu0 %v427_v21, %s1538_s11  ;;  %v624_v33 = vadd.f32 %v620_v22, %v612_v26  ;;  %v622_v34 = vadd.f32 %v616_v29, %v614_v28  ;;  %v618_v36 = vld [vmem:[%s1755_s14 + $0x50] sm:$0xff]  ;;  %v619_v38 = vld [vmem:[%s1755_s14 + $0x58] sm:$0xff]  ;;  %s952_s21 = sshll.u32 %s2044_s15, 4  ;;  %s870_s17 = sand.u32 1, %s1609_s28   ;;  %s2064_s21 = int_to_ptr.vmem [resolvable:$true] %s952_s21 }
  0x6c   : > { %440 = vrot.lane.b32.xlu1 %v429_v25, %s1538_s11  ;;  %v625_v35 = vadd.f32 %v621_v27, %v613_v30  ;;  %v623_v37 = vadd.f32 %v617_v32, %v615_v31  ;;  %s2068_s20 = sshll.u32 %s1609_s28, 9  ;;  %s2263_s3 = sld [smem:[#allocation23_spill]] }
  0x6d   : > { %v626_v39 = vadd.f32 %v622_v34, %v618_v36  ;;  %s2083_s19 = scalar_lea.hbm %s2236_s2, %s2068_s20  ;;  %p2264_p1 = scmp.ne.s32.totalorder %s2254_s12, 0 }
  0x6e   : > { %v627_v40 = vadd.f32 %v623_v37, %v619_v38  ;;  %s1542_s10 = smov [#allocation9]  }
  0x6f   : > { %632 = vrot.lane.b32.xlu0 %v624_v33, %s1538_s11  ;;  %s1373_s14 = sshll.u32 %s1542_s10, 4  ;;  %s1374_s14 = int_to_ptr.vmem [resolvable:$false] %s1373_s14 }
  0x70   : > { %634 = vrot.lane.b32.xlu1 %v625_v35, %s1538_s11 }
  0x73   : > { %636 = vrot.lane.b32.xlu0 %v626_v39, %s1538_s11 }
  0x74   : > { %638 = vrot.lane.b32.xlu1 %v627_v40, %s1538_s11  ;;  %s2074_s11 = scalar_lea.hbm %s2263_s3, %s2068_s20 }
  0xd9   : > { %v435_v41 = vpop.permute.xlu0 %434 }
  0xda   : > { %447 = vst.msk [vmem:[#allocation2 + $0x1] sm:$0xff] %vm446_vm5, %v435_v41  ;;  %v439_v42 = vpop.permute.xlu1 %438 }
  0xdb   : > { %449 = vst.msk [vmem:[#allocation2 + $0x19] sm:$0xff] %vm446_vm5, %v439_v42 }
  0xdd   : > { %v437_v43 = vpop.permute.xlu0 %436 }
  0xde   : > { %448 = vst.msk [vmem:[#allocation2 + $0x9] sm:$0xff] %vm446_vm5, %v437_v43  ;;  %v441_v44 = vpop.permute.xlu1 %440 }
  0xdf   : > { %450 = vst.msk [vmem:[#allocation2 + $0x21] sm:$0xff] %vm446_vm5, %v441_v44 }
  0xe1   : > { %v1793_v45 = vld [vmem:[#allocation2 + $0x1] sm:$0xff]  ;;  %v633_v46 = vpop.permute.xlu0 %632 }
  0xe2   : > { %471 = vrot.lane.b32.xlu0 %v1793_v45, %s1539_s8  ;;  %v635_v47 = vpop.permute.xlu1 %634  ;;  %v1797_v48 = vld [vmem:[#allocation2 + $0x19] sm:$0xff] }
  0xe3   : > { %v1799_v49 = vld [vmem:[#allocation2] sm:$0xff]  ;;  %v1805_v52 = vld [vmem:[#allocation2 + $0x18] sm:$0xff] }
  0xe5   : > { %v1801_v50 = vld [vmem:[#allocation2 + $0x9] sm:$0xff]  ;;  %v637_v53 = vpop.permute.xlu0 %636 }
  0xe6   : > { %v1803_v51 = vld [vmem:[#allocation2 + $0x8] sm:$0xff]  ;;  %473 = vrot.lane.b32.xlu1 %v1801_v50, %s1539_s8  ;;  %475 = vrot.lane.b32.xlu0 %v1797_v48, %s1539_s8  ;;  %v639_v57 = vpop.permute.xlu1 %638  ;;  %v1819_v58 = vld [vmem:[#allocation2 + $0x1a] sm:$0xff] }
  0xe7   : > { %v1811_v54 = vld [vmem:[#allocation2 + $0x21] sm:$0xff]  ;;  %v1813_v55 = vld [vmem:[#allocation2 + $0xa] sm:$0xff]  ;;  %v1901_v11 = vsub.f32 %v1819_v58, %v1805_v52 }
  0xe8   : > { %v1815_v56 = vld [vmem:[#allocation2 + $0x2] sm:$0xff]  ;;  %v1895_v9 = vsub.f32 %v1813_v55, %v1803_v51 }
  0xe9   : > { %644 = vst.msk [vmem:[#allocation2 + $0x1] sm:$0xff] %vm446_vm5, %v633_v46  ;;  %645 = vst.msk [vmem:[#allocation2 + $0x9] sm:$0xff] %vm446_vm5, %v635_v47  ;;  %v1821_v59 = vld [vmem:[#allocation2 + $0x20] sm:$0xff]  ;;  %v1883_v6 = vsub.f32 %v1815_v56, %v1799_v49  ;;  %v489_v14 = vadd.f32 %v1901_v11, %v1901_v11 }
  0xea   : > { %v1823_v60 = vld [vmem:[#allocation2 + $0x22] sm:$0xff]  ;;  %646 = vst.msk [vmem:[#allocation2 + $0x19] sm:$0xff] %vm446_vm5, %v637_v53  ;;  %537 = vrot.lane.b32.xlu0 %v1803_v51, %s1539_s8  ;;  %535 = vrot.lane.b32.xlu1 %v1799_v49, %s1539_s8  ;;  %v488_v13 = vadd.f32 %v1895_v9, %v1895_v9 }
  0xeb   : > { %647 = vst.msk [vmem:[#allocation2 + $0x21] sm:$0xff] %vm446_vm5, %v639_v57  ;;  %v487_v10 = vadd.f32 %v1883_v6, %v1883_v6  ;;  %v1913_v15 = vsub.f32 %v1823_v60, %v1821_v59 }
  0xed   : > { %v490_v16 = vadd.f32 %v1913_v15, %v1913_v15 }
  0xee   : > { %539 = vrot.lane.b32.xlu0 %v1805_v52, %s1539_s8  ;;  %477 = vrot.lane.b32.xlu1 %v1811_v54, %s1539_s8 }
  0xf0   : > { %v1843_v61 = vld [vmem:[#allocation2 + $0x1] sm:$0xff]  ;;  %v1849_v62 = vld [vmem:[#allocation2 + $0x9] sm:$0xff] }
  0xf1   : > { %v1851_v63 = vld [vmem:[#allocation2 + $0x19] sm:$0xff]  ;;  %v1857_v0 = vld [vmem:[#allocation2 + $0x8] sm:$0xff] }
  0xf2   : > { %565 = vrot.lane.b32.xlu0 %v1813_v55, %s1539_s8  ;;  %563 = vrot.lane.b32.xlu1 %v1815_v56, %s1539_s8  ;;  %v1859_v1 = vld [vmem:[#allocation2] sm:$0xff]  ;;  %v1867_v3 = vld [vmem:[#allocation2 + $0x18] sm:$0xff]  ;;  %v1873_v4 = vld [vmem:[#allocation2 + $0xa] sm:$0xff] }
  0xf3   : > { %v1865_v2 = vld [vmem:[#allocation2 + $0x21] sm:$0xff]  ;;  %v1925_v17 = vsub.f32 %v1873_v4, %v1857_v0 }
  0xf4   : > { %v1875_v5 = vld [vmem:[#allocation2 + $0x2] sm:$0xff]  ;;  %v1885_v7 = vld [vmem:[#allocation2 + $0x1a] sm:$0xff] }
  0xf5   : > { %v1887_v8 = vld [vmem:[#allocation2 + $0x20] sm:$0xff]  ;;  %v1933_v18 = vsub.f32 %v1875_v5, %v1859_v1  ;;  %v1937_v19 = vsub.f32 %v1885_v7, %v1867_v3  ;;  %v685_v22 = vadd.f32 %v1925_v17, %v1925_v17 }
  0xf6   : > { %567 = vrot.lane.b32.xlu0 %v1819_v58, %s1539_s8  ;;  %541 = vrot.lane.b32.xlu1 %v1821_v59, %s1539_s8  ;;  %v1903_v12 = vld [vmem:[#allocation2 + $0x22] sm:$0xff] }
  0xf7   : > { %v1945_v20 = vsub.f32 %v1903_v12, %v1887_v8  ;;  %v684_v21 = vadd.f32 %v1933_v18, %v1933_v18  ;;  %v686_v23 = vadd.f32 %v1937_v19, %v1937_v19 }
  0xf9   : > { %v687_v24 = vadd.f32 %v1945_v20, %v1945_v20 }
  0xfa   : > { %569 = vrot.lane.b32.xlu1 %v1823_v60, %s1539_s8  ;;  %668 = vrot.lane.b32.xlu0 %v1843_v61, %s1539_s8 }
  0xfe   : > { %670 = vrot.lane.b32.xlu1 %v1849_v62, %s1539_s8  ;;  %672 = vrot.lane.b32.xlu0 %v1851_v63, %s1539_s8 }
 0x102   : > { %734 = vrot.lane.b32.xlu0 %v1857_v0, %s1539_s8  ;;  %732 = vrot.lane.b32.xlu1 %v1859_v1, %s1539_s8 }
 0x106   : > { %736 = vrot.lane.b32.xlu0 %v1867_v3, %s1539_s8  ;;  %674 = vrot.lane.b32.xlu1 %v1865_v2, %s1539_s8 }
 0x10a   : > { %762 = vrot.lane.b32.xlu0 %v1873_v4, %s1539_s8  ;;  %760 = vrot.lane.b32.xlu1 %v1875_v5, %s1539_s8 }
 0x10e   : > { %764 = vrot.lane.b32.xlu0 %v1885_v7, %s1539_s8  ;;  %738 = vrot.lane.b32.xlu1 %v1887_v8, %s1539_s8 }
 0x112   : > { %766 = vrot.lane.b32.xlu1 %v1903_v12, %s1539_s8  ;;  %495 = vrot.lane.b32.xlu0 %v487_v10, %s1540_s18  ;;  %s918_s8 = sshll.u32 %s2031_s23, 4  ;;  %s2077_s8 = int_to_ptr.vmem [resolvable:$true] %s918_s8 }
 0x113   : > { %p1376_p5 = scmp.lt.s32.totalorder %s2077_s8, %s1374_s14 }
 0x116   : > { %497 = vrot.lane.b32.xlu1 %v488_v13, %s1540_s18  ;;  %499 = vrot.lane.b32.xlu0 %v489_v14, %s1540_s18 }
 0x11a   : > { %515 = vrot.lane.b32.xlu1 %v1883_v6, %s1541_s29  ;;  %517 = vrot.lane.b32.xlu0 %v1895_v9, %s1541_s29 }
 0x11e   : > { %501 = vrot.lane.b32.xlu1 %v490_v16, %s1540_s18  ;;  %519 = vrot.lane.b32.xlu0 %v1901_v11, %s1541_s29 }
 0x122   : > { %521 = vrot.lane.b32.xlu1 %v1913_v15, %s1541_s29  ;;  %714 = vrot.lane.b32.xlu0 %v1925_v17, %s1541_s29 }
 0x126   : > { %712 = vrot.lane.b32.xlu1 %v1933_v18, %s1541_s29  ;;  %716 = vrot.lane.b32.xlu0 %v1937_v19, %s1541_s29 }
 0x12a   : > { %718 = vrot.lane.b32.xlu1 %v1945_v20, %s1541_s29  ;;  %692 = vrot.lane.b32.xlu0 %v684_v21, %s1540_s18 }
 0x12e   : > { %694 = vrot.lane.b32.xlu1 %v685_v22, %s1540_s18  ;;  %696 = vrot.lane.b32.xlu0 %v686_v23, %s1540_s18 }
 0x132   : > { %698 = vrot.lane.b32.xlu1 %v687_v24, %s1540_s18 }
 0x154   : > { %v472_v25 = vpop.permute.xlu0 %471 }
 0x155   : > { %v483_v31 = vsub.f32 %v1793_v45, %v472_v25 }
 0x157   : > { %v551_v37 = vadd.f32 %v483_v31, %v483_v31 }
 0x158   : > { %v474_v26 = vpop.permute.xlu1 %473  ;;  %v476_v27 = vpop.permute.xlu0 %475 }
 0x159   : > { %v484_v30 = vsub.f32 %v1801_v50, %v474_v26  ;;  %v485_v38 = vsub.f32 %v1797_v48, %v476_v27 }
 0x15b   : > { %v552_v36 = vadd.f32 %v484_v30, %v484_v30  ;;  %v553_v46 = vadd.f32 %v485_v38, %v485_v38 }
 0x15c   : > { %v538_v28 = vpop.permute.xlu0 %537  ;;  %v536_v29 = vpop.permute.xlu1 %535 }
 0x15d   : > { %v548_v32 = vsub.f32 %v1803_v51, %v538_v28  ;;  %v547_v35 = vsub.f32 %v1799_v49, %v536_v29 }
 0x15f   : > { %v556_v39 = vadd.f32 %v552_v36, %v548_v32  ;;  %v555_v42 = vadd.f32 %v551_v37, %v547_v35 }
 0x160   : > { %v540_v33 = vpop.permute.xlu0 %539  ;;  %v478_v34 = vpop.permute.xlu1 %477 }
 0x161   : > { %v549_v43 = vsub.f32 %v1805_v52, %v540_v33  ;;  %v486_v47 = vsub.f32 %v1811_v54, %v478_v34 }
 0x163   : > { %v557_v57 = vadd.f32 %v553_v46, %v549_v43  ;;  %v554_v52 = vadd.f32 %v486_v47, %v486_v47 }
 0x164   : > { %v566_v40 = vpop.permute.xlu0 %565  ;;  %v564_v41 = vpop.permute.xlu1 %563 }
 0x165   : > { %v576_v44 = vsub.f32 %v1813_v55, %v566_v40  ;;  %v575_v45 = vsub.f32 %v1815_v56, %v564_v41 }
 0x167   : > { %v580_v50 = vadd.f32 %v576_v44, %v556_v39  ;;  %v579_v51 = vadd.f32 %v575_v45, %v555_v42 }
 0x168   : > { %v568_v49 = vpop.permute.xlu0 %567  ;;  %v542_v53 = vpop.permute.xlu1 %541 }
 0x169   : > { %v577_v48 = vsub.f32 %v1819_v58, %v568_v49  ;;  %v550_v10 = vsub.f32 %v1821_v59, %v542_v53  ;;  %592 = vrot.lane.b32.xlu1 %v579_v51, %s1541_s29  ;;  %594 = vrot.lane.b32.xlu0 %v580_v50, %s1541_s29 }
 0x16b   : > { %v581_v55 = vadd.f32 %v577_v48, %v557_v57  ;;  %v558_v14 = vadd.f32 %v554_v52, %v550_v10 }
 0x16c   : > { %v570_v13 = vpop.permute.xlu1 %569  ;;  %v669_v56 = vpop.permute.xlu0 %668 }
 0x16d   : > { %v578_v54 = vsub.f32 %v1823_v60, %v570_v13  ;;  %596 = vrot.lane.b32.xlu0 %v581_v55, %s1541_s29  ;;  %v680_v24 = vsub.f32 %v1843_v61, %v669_v56 }
 0x16f   : > { %v582_v16 = vadd.f32 %v578_v54, %v558_v14  ;;  %v748_v29 = vadd.f32 %v680_v24, %v680_v24 }
 0x170   : > { %v671_v21 = vpop.permute.xlu1 %670  ;;  %v673_v22 = vpop.permute.xlu0 %672 }
 0x171   : > { %598 = vrot.lane.b32.xlu1 %v582_v16, %s1541_s29  ;;  %v681_v23 = vsub.f32 %v1849_v62, %v671_v21  ;;  %v682_v30 = vsub.f32 %v1851_v63, %v673_v22 }
 0x173   : > { %v749_v60 = vadd.f32 %v681_v23, %v681_v23  ;;  %v750_v36 = vadd.f32 %v682_v30, %v682_v30 }
 0x174   : > { %v735_v58 = vpop.permute.xlu0 %734  ;;  %v733_v59 = vpop.permute.xlu1 %732 }
 0x175   : > { %v745_v25 = vsub.f32 %v1857_v0, %v735_v58  ;;  %v744_v28 = vsub.f32 %v1859_v1, %v733_v59 }
 0x177   : > { %v753_v31 = vadd.f32 %v749_v60, %v745_v25  ;;  %v752_v34 = vadd.f32 %v748_v29, %v744_v28 }
 0x178   : > { %v737_v26 = vpop.permute.xlu0 %736  ;;  %v675_v27 = vpop.permute.xlu1 %674 }
 0x179   : > { %v746_v35 = vsub.f32 %v1867_v3, %v737_v26  ;;  %v683_v0 = vsub.f32 %v1865_v2, %v675_v27 }
 0x17b   : > { %v754_v40 = vadd.f32 %v750_v36, %v746_v35  ;;  %v751_v3 = vadd.f32 %v683_v0, %v683_v0 }
 0x17c   : > { %v763_v32 = vpop.permute.xlu0 %762  ;;  %v761_v33 = vpop.permute.xlu1 %760 }
 0x17d   : > { %v773_v62 = vsub.f32 %v1873_v4, %v763_v32  ;;  %v772_v61 = vsub.f32 %v1875_v5, %v761_v33 }
 0x17f   : > { %v777_v37 = vadd.f32 %v773_v62, %v753_v31  ;;  %v776_v38 = vadd.f32 %v772_v61, %v752_v34 }
 0x180   : > { %v765_v1 = vpop.permute.xlu0 %764  ;;  %v739_v39 = vpop.permute.xlu1 %738 }
 0x181   : > { %v774_v63 = vsub.f32 %v1885_v7, %v765_v1  ;;  %v747_v41 = vsub.f32 %v1887_v8, %v739_v39  ;;  %788 = vrot.lane.b32.xlu1 %v776_v38, %s1541_s29  ;;  %790 = vrot.lane.b32.xlu0 %v777_v37, %s1541_s29 }
 0x183   : > { %v778_v4 = vadd.f32 %v774_v63, %v754_v40  ;;  %v755_v43 = vadd.f32 %v751_v3, %v747_v41 }
 0x184   : > { %v767_v5 = vpop.permute.xlu1 %766  ;;  %v496_v42 = vpop.permute.xlu0 %495 }
 0x185   : > { %v775_v2 = vsub.f32 %v1903_v12, %v767_v5  ;;  %792 = vrot.lane.b32.xlu0 %v778_v4, %s1541_s29  ;;  %v507_v7 = vadd.f32 %v496_v42, %v1883_v6 }
 0x187   : > { %v779_v44 = vadd.f32 %v775_v2, %v755_v43 }
 0x188   : > { %v498_v45 = vpop.permute.xlu1 %497  ;;  %v500_v46 = vpop.permute.xlu0 %499 }
 0x189   : > { %794 = vrot.lane.b32.xlu1 %v779_v44, %s1541_s29  ;;  %v508_v8 = vadd.f32 %v498_v45, %v1895_v9  ;;  %v509_v12 = vadd.f32 %v500_v46, %v1901_v11 }
 0x18c   : > { %v516_v47 = vpop.permute.xlu1 %515  ;;  %v518_v50 = vpop.permute.xlu0 %517 }
 0x18d   : > { %v527_v51 = vadd.f32 %v516_v47, %v507_v7  ;;  %v528_v49 = vadd.f32 %v518_v50, %v508_v8 }
 0x18f   : > { %584 = vst.msk [vmem:[%s1996_s0] sm:$0xff] %vm583_vm6, %v527_v51  ;;  %585 = vst.msk [vmem:[%s1996_s0 + $0x8] sm:$0xff] %vm583_vm6, %v528_v49 }
 0x190   : > { %v502_v6 = vpop.permute.xlu1 %501  ;;  %v520_v9 = vpop.permute.xlu0 %519 }
 0x191   : > { %v529_v53 = vadd.f32 %v520_v9, %v509_v12  ;;  %v510_v57 = vadd.f32 %v502_v6, %v1913_v15 }
 0x193   : > { %586 = vst.msk [vmem:[%s1996_s0 + $0x10] sm:$0xff] %vm583_vm6, %v529_v53 }
 0x194   : > { %v522_v11 = vpop.permute.xlu1 %521  ;;  %v715_v48 = vpop.permute.xlu0 %714 }
 0x195   : > { %v530_v10 = vadd.f32 %v522_v11, %v510_v57 }
 0x196   : > { %v804_v16 = vld [vmem:[%s1996_s0] sm:$0xff]  ;;  %v805_v24 = vld [vmem:[%s1996_s0 + $0x8] sm:$0xff] }
 0x197   : > { %587 = vst.msk [vmem:[%s1996_s0 + $0x18] sm:$0xff] %vm583_vm6, %v530_v10 }
 0x198   : > { %v713_v52 = vpop.permute.xlu1 %712  ;;  %v717_v55 = vpop.permute.xlu0 %716 }
 0x19a   : > { %v806_v25 = vld [vmem:[%s1996_s0 + $0x10] sm:$0xff] }
 0x19c   : > { %v719_v13 = vpop.permute.xlu1 %718  ;;  %v693_v56 = vpop.permute.xlu0 %692 }
 0x19d   : > { %v704_v14 = vadd.f32 %v693_v56, %v1933_v18 }
 0x19f   : > { %v724_v54 = vadd.f32 %v713_v52, %v704_v14 }
 0x1a0   : > { %v695_v21 = vpop.permute.xlu1 %694  ;;  %v697_v22 = vpop.permute.xlu0 %696 }
 0x1a1   : > { %780 = vst.msk [vmem:[%s2010_s16] sm:$0xff] %vm583_vm6, %v724_v54  ;;  %v808_v15 = vsub.f32 %v804_v16, %v724_v54  ;;  %v705_v58 = vadd.f32 %v695_v21, %v1925_v17  ;;  %v706_v59 = vadd.f32 %v697_v22, %v1937_v19  ;;  %v807_v19 = vld [vmem:[%s1996_s0 + $0x18] sm:$0xff] }
 0x1a3   : > { %v725_v23 = vadd.f32 %v715_v48, %v705_v58  ;;  %v726_v18 = vadd.f32 %v717_v55, %v706_v59  ;;  %v812_v27 = vand.u32 2147483647, %v808_v15 }
 0x1a4   : > { %v699_v26 = vpop.permute.xlu1 %698 }
 0x1a5   : > { %781 = vst.msk [vmem:[%s2010_s16 + $0x8] sm:$0xff] %vm583_vm6, %v725_v23  ;;  %v809_v28 = vsub.f32 %v805_v24, %v725_v23  ;;  %782 = vst.msk [vmem:[%s2010_s16 + $0x10] sm:$0xff] %vm583_vm6, %v726_v18  ;;  %v810_v60 = vsub.f32 %v806_v25, %v726_v18  ;;  %v707_v29 = vadd.f32 %v699_v26, %v1945_v20  ;;  %v816_v33 = vsel %vm583_vm6, %v812_v27, 0.0 }
 0x1a7   : > { %v813_v30 = vand.u32 2147483647, %v809_v28  ;;  %v814_v17 = vand.u32 2147483647, %v810_v60  ;;  %v727_v31 = vadd.f32 %v719_v13, %v707_v29 }
 0x1a9   : > { %783 = vst.msk [vmem:[%s2010_s16 + $0x18] sm:$0xff] %vm583_vm6, %v727_v31  ;;  %v811_v32 = vsub.f32 %v807_v19, %v727_v31  ;;  %v817_v34 = vsel %vm583_vm6, %v813_v30, 0.0  ;;  %v819_v61 = vsel %vm583_vm6, %v814_v17, 0.0  ;;  %s2085_s16 = scalar_lea.sflag [#allocation10], %s870_s17 }
 0x1aa   : > { %v818_v35 = vadd.f32 %v817_v34, %v816_v33 }
 0x1ab   : > { %v815_v62 = vand.u32 2147483647, %v811_v32 }
 0x1ac   : > { %v820_v36 = vadd.f32 %v819_v61, %v818_v35 }
 0x1ad   : > { %v821_v0 = vsel %vm583_vm6, %v815_v62, 0.0 }
 0x1ae   : > { %v822_v20 = vadd.f32 %v821_v0, %v820_v36 }
 0x1b0   : > { %823 = vadd.xlane.f32.xlu0 %v822_v20 }
 0x1db   : > { %v593_v37 = vpop.permute.xlu1 %592  ;;  %v595_v38 = vpop.permute.xlu0 %594 }
 0x1dc   : > { %604 = vst.msk [vmem:[%s2031_s23] sm:$0xff] %vm583_vm6, %v593_v37  ;;  %605 = vst.msk [vmem:[%s2031_s23 + $0x8] sm:$0xff] %vm583_vm6, %v595_v38 }
 0x1df   : > { %v597_v1 = vpop.permute.xlu0 %596 }
 0x1e0   : > { %606 = vst.msk [vmem:[%s2031_s23 + $0x10] sm:$0xff] %vm583_vm6, %v597_v1 }
 0x1e3   : > { %v599_v39 = vpop.permute.xlu1 %598  ;;  %v835_v40 = vld [vmem:[%s2031_s23] sm:$0xff]  ;;  %v836_v41 = vld [vmem:[%s2031_s23 + $0x8] sm:$0xff] }
 0x1e4   : > { %607 = vst.msk [vmem:[%s2031_s23 + $0x18] sm:$0xff] %vm583_vm6, %v599_v39 }
 0x1e7   : > { %v837_v2 = vld [vmem:[%s2031_s23 + $0x10] sm:$0xff] }
 0x1eb   : > { %v838_v47 = vld [vmem:[%s2031_s23 + $0x18] sm:$0xff]  ;;  %s1375_s23 = scalar_lea.vmem %s1374_s14, 1024 }
 0x1f3   : > { %v789_v63 = vpop.permute.xlu1 %788  ;;  %v791_v3 = vpop.permute.xlu0 %790 }
 0x1f4   : > { %800 = vst.msk [vmem:[%s2044_s15] sm:$0xff] %vm583_vm6, %v789_v63  ;;  %v839_v4 = vsub.f32 %v835_v40, %v789_v63  ;;  %801 = vst.msk [vmem:[%s2044_s15 + $0x8] sm:$0xff] %vm583_vm6, %v791_v3  ;;  %v840_v5 = vsub.f32 %v836_v41, %v791_v3 }
 0x1f6   : > { %v843_v42 = vand.u32 2147483647, %v839_v4  ;;  %v844_v43 = vand.u32 2147483647, %v840_v5 }
 0x1f7   : > { %v793_v44 = vpop.permute.xlu0 %792 }
 0x1f8   : > { %802 = vst.msk [vmem:[%s2044_s15 + $0x10] sm:$0xff] %vm583_vm6, %v793_v44  ;;  %v841_v45 = vsub.f32 %v837_v2, %v793_v44  ;;  %v847_v46 = vsel %vm583_vm6, %v843_v42, 0.0  ;;  %v848_v7 = vsel %vm583_vm6, %v844_v43, 0.0 }
 0x1f9   : > { %v849_v12 = vadd.f32 %v848_v7, %v847_v46 }
 0x1fa   : > { %v845_v8 = vand.u32 2147483647, %v841_v45 }
 0x1fb   : > { %v795_v50 = vpop.permute.xlu1 %794 }
 0x1fc   : > { %v850_v51 = vsel %vm583_vm6, %v845_v8, 0.0  ;;  %803 = vst.msk [vmem:[%s2044_s15 + $0x18] sm:$0xff] %vm583_vm6, %v795_v50  ;;  %v842_v49 = vsub.f32 %v838_v47, %v795_v50  ;;  %s1369_s15 = scalar_lea.vmem %s2077_s8, 512 }
 0x1fd   : > { %v851_v9 = vadd.f32 %v850_v51, %v849_v12  ;;  %p1370_p13 = scmp.ne.s32.totalorder %s2077_s8, %s1369_s15  ;;  %p1377_p7 = scmp.lt.s32.totalorder %s1375_s23, %s1369_s15 }
 0x1fe   : > { %v846_v6 = vand.u32 2147483647, %v842_v49 }
 0x1ff   : > { %p1371_p12 = pnand %p1370_p13, %p2264_p1  ;;  %p1378_p9 = por %p1377_p7, %p1376_p5 }
 0x200   : > { %v852_v53 = vsel %vm583_vm6, %v846_v6, 0.0 }
 0x201   : > { %v853_v57 = vadd.f32 %v852_v53, %v851_v9  ;;  %p1372_p10 = pneg %p1371_p12 }
 0x203   : > { %854 = vadd.xlane.f32.xlu1 %v853_v57  ;;  %p1379_p11 = pnand %p1378_p9, %p1372_p10 }
 0x23d   : > { %v824_v11 = vpop.xlane.xlu0 %823 }
 0x23e   : > { %v825_v48 = vrot.slane %v824_v11, 4 }
 0x240   : > { %v826_v10 = vadd.f32 %v825_v48, %v824_v11 }
 0x242   : > { %v827_v52 = vrot.slane %v826_v10, 2 }
 0x244   : > { %v828_v55 = vadd.f32 %v827_v52, %v826_v10 }
 0x246   : > { %v829_v13 = vrot.slane %v828_v55, 1 }
 0x248   : > { %v830_v56 = vadd.f32 %v829_v13, %v828_v55 }
 0x24a   : > { %1230 = vpush %v830_v56 }
 0x24b   : > { %1382 = shalt.err (!%p1379_p11)
}
 0x24c   : > { %s1383_s17 = scalar_lea.hbm %s2074_s11, 512  ;;  %s1387_s10 = scalar_lea.hbm %s2263_s3, 1024 }
 0x24d   : > { %p1384_p3 = scmp.ne.s32.totalorder %s2074_s11, %s1383_s17  ;;  %p1388_p2 = scmp.lt.u32.totalorder %s2074_s11, %s2263_s3 }
 0x24e   : > { %p1389_p4 = scmp.lt.u32.totalorder %s1387_s10, %s1383_s17  ;;  %p1391_p13 = scmp.lt.u32.totalorder %s1383_s17, %s2074_s11 }
 0x24f   : > { %p1385_p8 = pnand %p1384_p3, %p2264_p1 }
 0x250   : > { %p1390_p6 = por %p1389_p4, %p1388_p2 }
 0x251   : > { %p1386_p0 = pneg %p1385_p8 }
 0x252   : > { %p1392_p12 = por %p1391_p13, %p1390_p6 }
 0x254   : > { %p1393_p10 = pnand %p1392_p12, %p1386_p0 }
 0x256   : > { %1396 = shalt.err (!%p1393_p10)
}
 0x257   : > { %s1543_s15 = smov 128   ;;  %s1544_s23 = smov 8  }
 0x258   : > { %1239 = dma.vmem_to_hbm [thread:$0]  (%p2264_p1), %s2077_s8, 512, %s2074_s11, %s2085_s16, %s1543_s15, %s1543_s15, %s1544_s23  }
 0x259   : > { %s901_s1 = sshll.u32 %s1996_s0, 4  ;;  %s2117_s29 = scalar_lea.hbm %s2238_s4, %s2068_s20  ;;  %s2119_s1 = int_to_ptr.vmem [resolvable:$true] %s901_s1 }
 0x25a   : > { %s866_s10 = scalar_lea.sflag [#allocation5], %s1744_s9  ;;  %s1397_s14 = scalar_lea.vmem %s2119_s1, 512 }
 0x25b   : > { %p1398_p5 = scmp.ne.s32.totalorder %s2119_s1, %s1397_s14  ;;  %s1545_s3 = smov [#allocation8]  }
 0x25c   : > { %s1401_s26 = sshll.u32 %s1545_s3, 4  ;;  %s1402_s26 = int_to_ptr.vmem [resolvable:$false] %s1401_s26 }
 0x25d   : > { %p1399_p7 = pnand %p1398_p5, %p2264_p1  ;;  %s1403_s0 = scalar_lea.vmem %s1402_s26, 1024 }
 0x25e   : > { %p1404_p11 = scmp.lt.s32.totalorder %s2119_s1, %s1402_s26  ;;  %p1405_p3 = scmp.lt.s32.totalorder %s1403_s0, %s1397_s14 }
 0x25f   : > { %p1400_p9 = pneg %p1399_p7 }
 0x260   : > { %p1406_p8 = por %p1405_p3, %p1404_p11 }
 0x262   : > { %p1407_p0 = pnand %p1406_p8, %p1400_p9 }
 0x264   : > { %1410 = shalt.err (!%p1407_p0)
}
 0x265   : > { %s1411_s11 = scalar_lea.hbm %s2083_s19, 512  ;;  %s1415_s3 = scalar_lea.hbm %s2236_s2, 1024 }
 0x266   : > { %p1412_p2 = scmp.ne.s32.totalorder %s2083_s19, %s1411_s11  ;;  %p1416_p13 = scmp.lt.u32.totalorder %s2083_s19, %s2236_s2 }
 0x267   : > { %p1417_p12 = scmp.lt.u32.totalorder %s1415_s3, %s1411_s11  ;;  %p1419_p5 = scmp.lt.u32.totalorder %s1411_s11, %s2083_s19 }
 0x268   : > { %p1413_p4 = pnand %p1412_p2, %p2264_p1 }
 0x269   : > { %p1418_p10 = por %p1417_p12, %p1416_p13 }
 0x26a   : > { %p1414_p6 = pneg %p1413_p4 }
 0x26b   : > { %p1420_p7 = por %p1419_p5, %p1418_p10 }
 0x26d   : > { %p1421_p9 = pnand %p1420_p7, %p1414_p6 }
 0x26f   : > { %1424 = shalt.err (!%p1421_p9)
}
 0x270   : > { %1238 = dma.vmem_to_hbm [thread:$0]  (%p2264_p1), %s2119_s1, 512, %s2083_s19, %s866_s10, %s1543_s15, %s1543_s15, %s1544_s23  }
 0x271   : > { %s1425_s14 = scalar_lea.vmem %s2062_s22, 512  ;;  %s1546_s0 = smov [#allocation11]  }
 0x272   : > { %p1426_p11 = scmp.ne.s32.totalorder %s2062_s22, %s1425_s14  ;;  %s1429_s11 = sshll.u32 %s1546_s0, 4  ;;  %s1430_s11 = int_to_ptr.vmem [resolvable:$false] %s1429_s11 }
 0x273   : > { %s1431_s8 = scalar_lea.vmem %s1430_s11, 1024  ;;  %p1432_p0 = scmp.lt.s32.totalorder %s2062_s22, %s1430_s11 }
 0x274   : > { %p1427_p3 = pnand %p1426_p11, %p2264_p1  ;;  %p1433_p2 = scmp.lt.s32.totalorder %s1431_s8, %s1425_s14 }
 0x276   : > { %p1428_p8 = pneg %p1427_p3  ;;  %p1434_p4 = por %p1433_p2, %p1432_p0 }
 0x278   : > { %p1435_p6 = pnand %p1434_p4, %p1428_p8 }
 0x27a   : > { %1438 = shalt.err (!%p1435_p6)
}
 0x27b   : > { %s1439_s19 = scalar_lea.hbm %s2117_s29, 512  ;;  %s1443_s17 = scalar_lea.hbm %s2238_s4, 1024 }
 0x27c   : > { %p1440_p13 = scmp.ne.s32.totalorder %s2117_s29, %s1439_s19  ;;  %p1444_p5 = scmp.lt.u32.totalorder %s2117_s29, %s2238_s4 }
 0x27d   : > { %p1445_p7 = scmp.lt.u32.totalorder %s1443_s17, %s1439_s19  ;;  %p1447_p11 = scmp.lt.u32.totalorder %s1439_s19, %s2117_s29 }
 0x27e   : > { %p1441_p12 = pnand %p1440_p13, %p2264_p1 }
 0x27f   : > { %p1446_p9 = por %p1445_p7, %p1444_p5 }
 0x280   : > { %p1442_p10 = pneg %p1441_p12 }
 0x281   : > { %p1448_p3 = por %p1447_p11, %p1446_p9 }
 0x283   : > { %p1449_p8 = pnand %p1448_p3, %p1442_p10 }
 0x285   : > { %1452 = shalt.err (!%p1449_p8)
}
 0x286   : > { %1240 = dma.vmem_to_hbm [thread:$0]  (%p2264_p1), %s2062_s22, 512, %s2117_s29, %s2085_s16, %s1543_s15, %s1543_s15, %s1544_s23  }
 0x287   : > { %s2177_s0 = scalar_lea.hbm %s2239_s5, %s2068_s20  ;;  %s881_s11 = scalar_lea.sflag [#allocation13], %s1744_s9 }
 0x288   : > { %s1453_s8 = scalar_lea.vmem %s2064_s21, 512  ;;  %s1547_s19 = smov [#allocation12]  }
 0x289   : > { %p1454_p0 = scmp.ne.s32.totalorder %s2064_s21, %s1453_s8  ;;  %s1457_s1 = sshll.u32 %s1547_s19, 4  ;;  %s1458_s1 = int_to_ptr.vmem [resolvable:$false] %s1457_s1 }
 0x28a   : > { %s1459_s10 = scalar_lea.vmem %s1458_s1, 1024  ;;  %p1460_p6 = scmp.lt.s32.totalorder %s2064_s21, %s1458_s1 }
 0x28b   : > { %p1455_p2 = pnand %p1454_p0, %p2264_p1  ;;  %p1461_p13 = scmp.lt.s32.totalorder %s1459_s10, %s1453_s8 }
 0x28d   : > { %p1456_p4 = pneg %p1455_p2  ;;  %p1462_p12 = por %p1461_p13, %p1460_p6 }
 0x28f   : > { %p1463_p10 = pnand %p1462_p12, %p1456_p4 }
 0x291   : > { %1466 = shalt.err (!%p1463_p10)
}
 0x292   : > { %s1467_s22 = scalar_lea.hbm %s2177_s0, 512  ;;  %s1471_s29 = scalar_lea.hbm %s2239_s5, 1024 }
 0x293   : > { %p1468_p5 = scmp.ne.s32.totalorder %s2177_s0, %s1467_s22  ;;  %p1472_p11 = scmp.lt.u32.totalorder %s2177_s0, %s2239_s5 }
 0x294   : > { %p1473_p3 = scmp.lt.u32.totalorder %s1471_s29, %s1467_s22  ;;  %p1475_p0 = scmp.lt.u32.totalorder %s1467_s22, %s2177_s0 }
 0x295   : > { %p1469_p7 = pnand %p1468_p5, %p2264_p1 }
 0x296   : > { %p1474_p8 = por %p1473_p3, %p1472_p11 }
 0x297   : > { %p1470_p9 = pneg %p1469_p7 }
 0x298   : > { %p1476_p2 = por %p1475_p0, %p1474_p8 }
 0x29a   : > { %p1477_p4 = pnand %p1476_p2, %p1470_p9 }
 0x29c   : > { %1480 = shalt.err (!%p1477_p4)
}
 0x29d   : > { %1241 = dma.vmem_to_hbm [thread:$0]  (%p2264_p1), %s2064_s21, 512, %s2177_s0, %s881_s11, %s1543_s15, %s1543_s15, %s1544_s23   ;;  %vm833_vm7 = vcmask 0   ;;  %v855_v54 = vpop.xlane.xlu1 %854 }
 0x29e   : > { %p383_p6 = scmp.lt.s32.totalorder %s1609_s28, 1  ;;  %s1231_s8 = spop %1230  ;;  %v856_v16 = vrot.slane %v855_v54, 4 }
 0x29f   : > { %v832_v14 = vstv %s1231_s8 }
 0x2a0   : > { %s2274_s28 = smov (!%p383_p6, %s1609_s28), 1  ;;  %v857_v21 = vadd.f32 %v856_v16, %v855_v54 }
 0x2a1   : > { %s385_s14 = scalar_lea.vmem %s2240_s6, %s2274_s28  ;;  %s388_s21 = scalar_lea.vmem %s2241_s7, %s2274_s28 }
 0x2a2   : > { %834 = vst.msk [vmem:[%s385_s14] sm:$0x1] %vm833_vm7, %v832_v14  ;;  %v858_v22 = vrot.slane %v857_v21, 2 }
 0x2a4   : > { %v859_v15 = vadd.f32 %v858_v22, %v857_v21 }
 0x2a6   : > { %v860_v58 = vrot.slane %v859_v15, 1 }
 0x2a8   : > { %v861_v59 = vadd.f32 %v860_v58, %v859_v15 }
 0x2aa   : > { %1232 = vpush %v861_v59 }
 0x2db   : > { %s1233_s15 = spop %1232 }
 0x2dc   : > { %v863_v23 = vstv %s1233_s15 }
 0x2dd   : > { %864 = vst.msk [vmem:[%s388_s21] sm:$0x1] %vm833_vm7, %v863_v23 }
 0x2de PF: > { %s973_s23 = sand.u32 1, %s1519_s24   ;;  %p2265_p1 = scmp.ne.s32.totalorder %s2255_s13, 0 }
 0x2df   : > { %p2266_p13 = scmp.ge.s32.totalorder %s1531_s27, 2  ;;  %s974_s0 = scalar_lea.sflag [#allocation5], %s973_s23 }
 0x2e1   : > { %p1254_p12 = pnand %p2266_p13, %p2265_p1 }
 0x2e3   : > { %1506 = dma.done.wait (!%p1254_p12), %s974_s0, 512  }
 0x2e4   : > { %1508 = vsyncadd (!%p1254_p12), %s974_s0, 4294966784  ;;  %s2267_s11 = sadd.s32 4294967294, %s1531_s27  }
 0x2e5   : > { %s982_s19 = sand.u32 1, %s2267_s11  }
 0x2e6   : > { %s983_s1 = scalar_lea.sflag [#allocation10], %s982_s19 }
 0x2e7   : > { %1510 = dma.done.wait (!%p1254_p12), %s983_s1, 1024  }
 0x2e8   : > { %1512 = vsyncadd (!%p1254_p12), %s983_s1, 4294966272  ;;  %s1001_s28 = scalar_lea.sflag [#allocation13], %s973_s23 }
 0x2e9   : > { %1514 = dma.done.wait (!%p1254_p12), %s1001_s28, 512  }
 0x2ea   : > { %1516 = vsyncadd (!%p1254_p12), %s1001_s28, 4294966784  ;;  %s2268_s10 = sld [smem:[#allocation19_spill]]  ;;  %s2269_s26 = sld [smem:[#allocation20_spill]] }
 0x2eb   : > { %p30_p10 = scmp.ge.s32.totalorder %s1613_s30, 4   ;;  %s2270_s24 = smov %s1523_s25 }
 0x2ec   : > { %s2272_s27 = smov %s1613_s30 }
 0x2ed   :  { %32 = sbr.rel (!%p30_p10) target bundleno = 15 (0xf), region = 159 }
 0x2f0   : > { %s2271_s25 = smov %s2268_s10 }
 0x2f4   :  { %1018 = vsyncpa [#allocation4], 1 }
 0x2f5   :  { %1020 = vsyncpa [#allocation4 + $0x1], 1 }
 0x2f6   :  { %1021 = vsyncpa [#allocation7], 1 }
 0x2f7   :  { %1023 = vsyncpa [#allocation7 + $0x1], 1 }
 0x2f8   :  { %1024 = vsyncpa [#allocation5], 1 }
 0x2f9   :  { %1026 = vsyncpa [#allocation5 + $0x1], 1 }
 0x2fa   :  { %1027 = vsyncpa [#allocation10], 1 }
 0x2fb   :  { %1029 = vsyncpa [#allocation10 + $0x1], 1 }
 0x2fc   :  { %1030 = vsyncpa [#allocation13], 1 }
 0x2fd   :  { %1032 = vsyncpa [#allocation13 + $0x1], 1 }

</bundles_post_ra>
